<compile_context>
chip_gen: v5e
topology: v5e:2x2
jax: 0.10.0
libtpu: 0.0.40
codegen_flags: <defaults>
</compile_context>

<pallas_src>
import math

import jax
import jax.numpy as jnp
from jax import lax
from jax.experimental import pallas as pl
from jax.experimental.pallas import tpu as pltpu

# ---------------- config (small, consistent with the module) ----------------
B = 2             # batch
S = 8             # seq_len
D = 32            # dim
N_HEADS = 4
N_KV_HEADS = 2    # GQA: fewer KV heads than Q heads
HEAD_DIM = D // N_HEADS            # 8
N_REP = N_HEADS // N_KV_HEADS      # 2
DQ = N_HEADS * HEAD_DIM            # 32
DK = N_KV_HEADS * HEAD_DIM         # 16
HIDDEN = 64                        # config.hidden_dim (set explicitly)
EPS = 1e-5
ROPE_THETA = 10000.0
N_LAYERS = 4                       # layers pipelined through the grid

LANE = 128                         # vreg lane width / segment padding
TSTK = N_HEADS * S                 # head-stacked rows per batch (32)
NSEG = 5                           # q | q_rot | k | k_rot | v


# ---------------------------- Pallas kernel ---------------------------------
def minimind_stack_kernel(
    x_ref,        # (S, D)           tokens of batch b (layer-0 input)
    rope_ref,     # (2, S, LANE)     [cos ; sin], lane-padded
    amask_ref,    # (TSTK, TSTK)     block-diagonal causal additive mask
    selmask_ref,  # (TSTK, LANE)     per-head output select mask (0/1)
    norms_ref,    # (2, D)           [attention_norm ; ffn_norm] of layer l
    wproj_ref,    # (D, NSEG*LANE)   [wq|wq@R|wk|wk@R|wv] bf16, lane-padded
    wo_ref,       # (LANE, D)        wo^T, rows padded (bf16)
    w13_ref,      # (D, 2*LANE)      [w1^T | w3^T] lane-padded (bf16)
    w2_ref,       # (LANE, D)        w2^T, rows padded (bf16)
    o_ref,        # (S, D)           carry / output for batch b
):
    l = pl.program_id(1)

    # layer 0: seed the carry (output block stays resident across the l axis)
    @pl.when(l == 0)
    def _():
        o_ref[...] = x_ref[...]

    x = o_ref[...]                                   # [S, D] f32 carry

    def rmsnorm(v, w):
        ms = jnp.mean(v * v, axis=-1, keepdims=True)
        return (v * lax.rsqrt(ms + EPS)) * w

    anw = norms_ref[0:1, :]
    fnw = norms_ref[1:2, :]

    # ---- attention branch ----
    xn = rmsnorm(x, anw)

    # fused projection: q | q_rot | k | k_rot | v, each padded to 128 lanes.
    # RoPE rotation, GQA repeat and 1/sqrt(hd) are folded into the weights.
    qkvr = jnp.dot(xn.astype(jnp.bfloat16), wproj_ref[...],
                   preferred_element_type=jnp.float32)          # [S, 640]
    q_seg = qkvr[:, 0 * LANE:1 * LANE]
    qr_seg = qkvr[:, 1 * LANE:2 * LANE]
    k_seg = qkvr[:, 2 * LANE:3 * LANE]
    kr_seg = qkvr[:, 3 * LANE:4 * LANE]
    v_seg = qkvr[:, 4 * LANE:5 * LANE]

    cos = rope_ref[0]                                # [S, LANE]
    sin = rope_ref[1]
    q = q_seg * cos + qr_seg * sin                   # lanes >= DQ stay 0
    k = k_seg * cos + kr_seg * sin

    # head-stack Q/K along sublanes -> [TSTK, HEAD_DIM]
    q_stk = jnp.concatenate(
        [q[:, h * HEAD_DIM:(h + 1) * HEAD_DIM] for h in range(N_HEADS)], axis=0)
    k_stk = jnp.concatenate(
        [k[:, h * HEAD_DIM:(h + 1) * HEAD_DIM] for h in range(N_HEADS)], axis=0)

    # scores: contract dim 1 of both operands (no materialized transpose)
    s = lax.dot_general(q_stk, k_stk, (((1,), (1,)), ((), ())),
                        preferred_element_type=jnp.float32)     # [TSTK, TSTK]
    s = s + amask_ref[...]
    s = s - jnp.max(s, axis=-1, keepdims=True)
    p = jnp.exp(s)                                   # masked entries -> 0
    p = p * pl.reciprocal(jnp.sum(p, axis=-1, keepdims=True), approx=True)

    # PV with sublane-tiled full-width V; block-diagonal p zeroes cross-head
    # terms, the select mask keeps head h's column slice, and the un-stack is
    # 3 sublane-aligned row-block adds (no lane concats).
    v_rep = jnp.concatenate([v_seg] * N_HEADS, axis=0)           # [TSTK, LANE]
    o_wide = jnp.dot(p, v_rep, preferred_element_type=jnp.float32)
    o_sel = o_wide * selmask_ref[...]                            # [TSTK, LANE]
    attn = o_sel[0:S]
    for h in range(1, N_HEADS):
        attn = attn + o_sel[h * S:(h + 1) * S]                   # [S, LANE]

    attn = jnp.dot(attn.astype(jnp.bfloat16), wo_ref[...],
                   preferred_element_type=jnp.float32)           # [S, D]

    h1 = x + attn                                    # residual 1

    # ---- SwiGLU FFN branch ----
    hn = rmsnorm(h1, fnw)
    ag = jnp.dot(hn.astype(jnp.bfloat16), w13_ref[...],
                 preferred_element_type=jnp.float32)             # [S, 256]
    a = ag[:, 0:LANE]                                # lanes >= HIDDEN are 0
    g = ag[:, LANE:2 * LANE]
    swi = a * jax.nn.sigmoid(a) * g
    ffn = jnp.dot(swi.astype(jnp.bfloat16), w2_ref[...],
                  preferred_element_type=jnp.float32)            # [S, D]

    o_ref[...] = (h1 + ffn).astype(o_ref.dtype)      # residual 2 -> carry


# ------------------------------ wrapper --------------------------------------
def _pair_swap(n):
    """Signed pair-swap R: (x @ R)[2j] = -x[2j+1], (x @ R)[2j+1] = x[2j]."""
    r = jnp.zeros((n, n), jnp.float32)
    i = jnp.arange(0, n, 2)
    r = r.at[i + 1, i].set(-1.0)
    r = r.at[i, i + 1].set(1.0)
    return r


def _repeat_kv_cols(w_t):
    """(D, DK) -> (D, DQ): duplicate each kv head's columns per Q head."""
    blocks = [w_t[:, (h // N_REP) * HEAD_DIM:(h // N_REP + 1) * HEAD_DIM]
              for h in range(N_HEADS)]
    return jnp.concatenate(blocks, axis=1)


def _pad_cols(w):
    return jnp.pad(w, ((0, 0), (0, LANE - w.shape[1])))


def _pad_rows(w):
    return jnp.pad(w, ((0, LANE - w.shape[0]), (0, 0)))


def _pack_layers(layer_params):
    """Stack per-layer packed weights along a leading layer axis."""
    R = _pair_swap(DQ)
    scale = 1.0 / math.sqrt(HEAD_DIM)
    norms, wproj, wo, w13, w2 = [], [], [], [], []
    for p in layer_params:
        wq_t = p["wq"].T * scale                       # scale folded into Q
        wk_t = _repeat_kv_cols(p["wk"].T)              # GQA folded into K
        wv_t = _repeat_kv_cols(p["wv"].T)              # GQA folded into V
        wproj.append(jnp.concatenate(
            [_pad_cols(wq_t), _pad_cols(wq_t @ R),
             _pad_cols(wk_t), _pad_cols(wk_t @ R),
             _pad_cols(wv_t)], axis=1).astype(jnp.bfloat16))     # (D, 640)
        wo.append(_pad_rows(p["wo"].T).astype(jnp.bfloat16))      # (128, D)
        w13.append(jnp.concatenate(
            [_pad_cols(p["w1"].T), _pad_cols(p["w3"].T)],
            axis=1).astype(jnp.bfloat16))                         # (D, 256)
        w2.append(_pad_rows(p["w2"].T).astype(jnp.bfloat16))      # (128, D)
        norms.append(jnp.stack([p["attention_norm"], p["ffn_norm"]]))
    return (jnp.stack(norms), jnp.stack(wproj), jnp.stack(wo),
            jnp.stack(w13), jnp.stack(w2))


def minimind_blocks(x, layer_params, cos_hd, sin_hd):
    """Apply a stack of MiniMindBlocks. x: [B, S, D] f32."""
    n_layers = len(layer_params)
    norms_all, wproj_all, wo_all, w13_all, w2_all = _pack_layers(layer_params)

    # RoPE cos/sin, duplicated per interleaved pair and tiled per head
    # (identical for Q and K because the GQA repeat is folded into K/V
    # weights), lane-padded to 128.
    cos_full = jnp.tile(jnp.repeat(cos_hd, 2, axis=-1), (1, N_HEADS))   # [S, DQ]
    sin_full = jnp.tile(jnp.repeat(sin_hd, 2, axis=-1), (1, N_HEADS))
    rope = jnp.stack([_pad_cols(cos_full), _pad_cols(sin_full)])
    rope = rope.astype(jnp.float32)                                     # [2,S,128]

    # block-diagonal causal mask for the head-stacked [TSTK, TSTK] scores
    idx = jnp.arange(TSTK)
    same_head = (idx[:, None] // S) == (idx[None, :] // S)
    causal = (idx[None, :] % S) <= (idx[:, None] % S)
    amask = jnp.where(same_head & causal, 0.0, -1e30).astype(jnp.float32)

    # per-head output select mask: stacked row-block h keeps lanes of head h
    row_head = jnp.arange(TSTK) // S
    col_head = jnp.arange(LANE) // HEAD_DIM
    selmask = (row_head[:, None] == col_head[None, :]).astype(jnp.float32)

    x2d = x.reshape(B * S, D).astype(jnp.float32)

    out2d = pl.pallas_call(
        minimind_stack_kernel,
        out_shape=jax.ShapeDtypeStruct((B * S, D), jnp.float32),
        grid=(B, n_layers),
        in_specs=[
            pl.BlockSpec((S, D), lambda b, l: (b, 0)),                     # x
            pl.BlockSpec((2, S, LANE), lambda b, l: (0, 0, 0)),            # rope
            pl.BlockSpec((TSTK, TSTK), lambda b, l: (0, 0)),               # amask
            pl.BlockSpec((TSTK, LANE), lambda b, l: (0, 0)),               # selmask
            pl.BlockSpec((None, 2, D), lambda b, l: (l, 0, 0)),            # norms
            pl.BlockSpec((None, D, NSEG * LANE), lambda b, l: (l, 0, 0)),  # wproj
            pl.BlockSpec((None, LANE, D), lambda b, l: (l, 0, 0)),         # wo
            pl.BlockSpec((None, D, 2 * LANE), lambda b, l: (l, 0, 0)),     # w13
            pl.BlockSpec((None, LANE, D), lambda b, l: (l, 0, 0)),         # w2
        ],
        out_specs=pl.BlockSpec((S, D), lambda b, l: (b, 0)),
        compiler_params=pltpu.CompilerParams(
            dimension_semantics=("parallel", "arbitrary")),
    )(x2d, rope, amask, selmask, norms_all, wproj_all, wo_all, w13_all, w2_all)
    return out2d.reshape(B, S, D)


# --------------------------- pure-JAX reference -------------------------------
def reference_block(x, p, cos_hd, sin_hd):
    def rms(v, w):
        return w * (v * lax.rsqrt(jnp.mean(v * v, -1, keepdims=True) + EPS))

    xn = rms(x, p["attention_norm"])
    q = xn @ p["wq"].T
    k = xn @ p["wk"].T
    v = xn @ p["wv"].T
    q = q.reshape(B, S, N_HEADS, HEAD_DIM)
    k = k.reshape(B, S, N_KV_HEADS, HEAD_DIM)
    v = v.reshape(B, S, N_KV_HEADS, HEAD_DIM)

    def rope(t, nh):
        tr = t.reshape(B, S, nh, HEAD_DIM // 2, 2)
        ev, od = tr[..., 0], tr[..., 1]
        c = cos_hd[None, :, None, :]
        s = sin_hd[None, :, None, :]
        oe = ev * c - od * s
        oo = ev * s + od * c
        return jnp.stack([oe, oo], axis=-1).reshape(B, S, nh, HEAD_DIM)

    q, k = rope(q, N_HEADS), rope(k, N_KV_HEADS)
    k = jnp.repeat(k, N_REP, axis=2)   # repeat_kv
    v = jnp.repeat(v, N_REP, axis=2)
    q, k, v = (jnp.transpose(t, (0, 2, 1, 3)) for t in (q, k, v))   # [B,H,S,hd]
    scores = q @ jnp.swapaxes(k, -1, -2) / math.sqrt(HEAD_DIM)
    mask = jnp.where(jnp.arange(S)[None, :] > jnp.arange(S)[:, None], -jnp.inf, 0.0)
    scores = jax.nn.softmax(scores + mask, axis=-1)
    attn = scores @ v
    attn = jnp.transpose(attn, (0, 2, 1, 3)).reshape(B, S, DQ)
    h = x + attn @ p["wo"].T
    hn = rms(h, p["ffn_norm"])
    ffn = (jax.nn.silu(hn @ p["w1"].T) * (hn @ p["w3"].T)) @ p["w2"].T
    return h + ffn


# -------------------------------- main ----------------------------------------
if __name__ == "__main__":
    key = jax.random.PRNGKey(0)

    def init_linear(k, out_f, in_f):
        bound = 1.0 / math.sqrt(in_f)
        return jax.random.uniform(k, (out_f, in_f), jnp.float32, -bound, bound)

    layer_params = []
    for li in range(N_LAYERS):
        lk = jax.random.fold_in(key, li)
        ks = jax.random.split(lk, 9)
        layer_params.append({
            "wq": init_linear(ks[0], DQ, D),
            "wk": init_linear(ks[1], DK, D),
            "wv": init_linear(ks[2], DK, D),
            "wo": init_linear(ks[3], D, DQ),
            "w1": init_linear(ks[4], HIDDEN, D),
            "w2": init_linear(ks[5], D, HIDDEN),
            "w3": init_linear(ks[6], HIDDEN, D),
            # non-trivial norm weights to exercise the RMSNorm scaling
            "attention_norm": 1.0 + 0.1 * jax.random.normal(ks[7], (D,), jnp.float32),
            "ffn_norm": 1.0 + 0.1 * jax.random.normal(ks[8], (D,), jnp.float32),
        })

    x = jax.random.normal(jax.random.fold_in(key, 1000), (B, S, D), jnp.float32)

    # pos_cis equivalent: cos/sin tables of shape [S, HEAD_DIM//2]
    freqs = 1.0 / (ROPE_THETA ** (jnp.arange(0, HEAD_DIM, 2, dtype=jnp.float32) / HEAD_DIM))
    angles = jnp.outer(jnp.arange(S, dtype=jnp.float32), freqs)
    cos_hd, sin_hd = jnp.cos(angles), jnp.sin(angles)

    out = jax.block_until_ready(minimind_blocks(x, layer_params, cos_hd, sin_hd))

    ref = x
    for p in layer_params:
        ref = reference_block(ref, p, cos_hd, sin_hd)
    ref = jax.block_until_ready(ref)

    assert out.shape == (B, S, D)
    # bf16 weight matmuls accumulated across N_LAYERS stacked layers -> use a
    # slightly looser tolerance than the single-layer all-f32 check.
    assert jnp.allclose(out, ref, rtol=3e-2, atol=3e-2), "mismatch vs reference"

    print("KERNEL_OK")
</pallas_src>

<mosaic_0001>
module attributes {stable_mosaic.version = 11 : i64} {
  func.func @minimind_stack_kernel(%arg0: i32, %arg1: i32, %arg2: memref<8x32xf32, #tpu.memory_space<vmem>>, %arg3: memref<2x8x128xf32, #tpu.memory_space<vmem>>, %arg4: memref<32x32xf32, #tpu.memory_space<vmem>>, %arg5: memref<32x128xf32, #tpu.memory_space<vmem>>, %arg6: memref<1x2x32xf32, #tpu.memory_space<vmem>>, %arg7: memref<1x32x640xbf16, #tpu.memory_space<vmem>>, %arg8: memref<1x128x32xbf16, #tpu.memory_space<vmem>>, %arg9: memref<1x32x256xbf16, #tpu.memory_space<vmem>>, %arg10: memref<1x128x32xbf16, #tpu.memory_space<vmem>>, %arg11: memref<8x32xf32, #tpu.memory_space<vmem>>) attributes {dimension_semantics = [#tpu.dimension_semantics<parallel>, #tpu.dimension_semantics<arbitrary>], iteration_bounds = array<i64: 2, 4>, scalar_prefetch = 0 : i64, scratch_operands = 0 : i64, tpu.core_type = #tpu.core_type<tc>, window_params = [{transform_indices = @transform_0, window_bounds = array<i64: 8, 32>}, {pipeline_mode = #tpu.pipeline_mode<synchronous>, transform_indices = @transform_1, window_bounds = array<i64: 2, 8, 128>}, {pipeline_mode = #tpu.pipeline_mode<synchronous>, transform_indices = @transform_2, window_bounds = array<i64: 32, 32>}, {pipeline_mode = #tpu.pipeline_mode<synchronous>, transform_indices = @transform_3, window_bounds = array<i64: 32, 128>}, {transform_indices = @transform_4, window_bounds = array<i64: 1, 2, 32>}, {transform_indices = @transform_5, window_bounds = array<i64: 1, 32, 640>}, {transform_indices = @transform_6, window_bounds = array<i64: 1, 128, 32>}, {transform_indices = @transform_7, window_bounds = array<i64: 1, 32, 256>}, {transform_indices = @transform_8, window_bounds = array<i64: 1, 128, 32>}, {transform_indices = @transform_9, window_bounds = array<i64: 8, 32>}]} {
    %c0_i32 = arith.constant 0 : i32
    %0 = arith.cmpi eq, %arg1, %c0_i32 : i32
    %1 = arith.extui %0 : i1 to i32
    %c0_i32_0 = arith.constant 0 : i32
    %2 = arith.cmpi ne, %1, %c0_i32_0 : i32
    scf.if %2 {
      %c0_45 = arith.constant 0 : index
      %c0_46 = arith.constant 0 : index
      %109 = vector.load %arg2[%c0_45, %c0_46] : memref<8x32xf32, #tpu.memory_space<vmem>>, vector<8x32xf32>
      %c0_47 = arith.constant 0 : index
      %c0_48 = arith.constant 0 : index
      %110 = vector.load %arg11[%c0_47, %c0_48] : memref<8x32xf32, #tpu.memory_space<vmem>>, vector<8x32xf32>
      tpu.vector_store %arg11[%c0_47, %c0_48], %109 {strides = array<i32>} : memref<8x32xf32, #tpu.memory_space<vmem>>, vector<8x32xf32>,
    } else {
    }
    %c0 = arith.constant 0 : index
    %c0_1 = arith.constant 0 : index
    %3 = vector.load %arg11[%c0, %c0_1] : memref<8x32xf32, #tpu.memory_space<vmem>>, vector<8x32xf32>
    %c0_2 = arith.constant 0 : index
    %c0_3 = arith.constant 0 : index
    %c0_4 = arith.constant 0 : index
    %4 = vector.load %arg6[%c0_2, %c0_3, %c0_4] : memref<1x2x32xf32, #tpu.memory_space<vmem>>, vector<1x1x32xf32>
    %5 = vector.shape_cast %4 : vector<1x1x32xf32> to vector<1x32xf32>
    %c0_5 = arith.constant 0 : index
    %c1 = arith.constant 1 : index
    %c0_6 = arith.constant 0 : index
    %6 = vector.load %arg6[%c0_5, %c1, %c0_6] : memref<1x2x32xf32, #tpu.memory_space<vmem>>, vector<1x1x32xf32>
    %7 = vector.shape_cast %6 : vector<1x1x32xf32> to vector<1x32xf32>
    %8 = arith.mulf %3, %3 : vector<8x32xf32>
    %cst = arith.constant dense<0.000000e+00> : vector<8xf32>
    %9 = vector.multi_reduction <add>, %8, %cst [1] : vector<8x32xf32> to vector<8xf32>
    %10 = vector.shape_cast %9 : vector<8xf32> to vector<8x1xf32>
    %cst_7 = arith.constant 3.200000e+01 : f32
    %11 = vector.broadcast %cst_7 : f32 to vector<8x1xf32>
    %12 = arith.divf %10, %11 : vector<8x1xf32>
    %cst_8 = arith.constant 9.99999974E-6 : f32
    %13 = vector.broadcast %cst_8 : f32 to vector<8x1xf32>
    %14 = arith.addf %12, %13 : vector<8x1xf32>
    %15 = math.rsqrt %14 : vector<8x1xf32>
    %16 = vector.broadcast %15 : vector<8x1xf32> to vector<8x32xf32>
    %17 = arith.mulf %3, %16 : vector<8x32xf32>
    %18 = vector.broadcast %5 : vector<1x32xf32> to vector<8x32xf32>
    %19 = arith.mulf %17, %18 : vector<8x32xf32>
    %20 = arith.truncf %19 : vector<8x32xf32> to vector<8x32xbf16>
    %c0_9 = arith.constant 0 : index
    %c0_10 = arith.constant 0 : index
    %c0_11 = arith.constant 0 : index
    %21 = vector.load %arg7[%c0_9, %c0_10, %c0_11] : memref<1x32x640xbf16, #tpu.memory_space<vmem>>, vector<1x32x640xbf16>
    %22 = vector.shape_cast %21 : vector<1x32x640xbf16> to vector<32x640xbf16>
    %cst_12 = arith.constant dense<0.000000e+00> : vector<8x640xf32>
    %23 = tpu.matmul %20, %22, %cst_12 {dimension_numbers = #tpu.dot_dimension_numbers<[1], [0], [0], [1], [0, 0, 1, 1], [], []>} : vector<8x32xbf16>, vector<32x640xbf16>, vector<8x640xf32> -> vector<8x640xf32>
    %24 = vector.extract_strided_slice %23 {offsets = [0, 0], sizes = [8, 128], strides = [1, 1]} : vector<8x640xf32> to vector<8x128xf32>
    %25 = vector.extract_strided_slice %23 {offsets = [0, 128], sizes = [8, 128], strides = [1, 1]} : vector<8x640xf32> to vector<8x128xf32>
    %26 = vector.extract_strided_slice %23 {offsets = [0, 256], sizes = [8, 128], strides = [1, 1]} : vector<8x640xf32> to vector<8x128xf32>
    %27 = vector.extract_strided_slice %23 {offsets = [0, 384], sizes = [8, 128], strides = [1, 1]} : vector<8x640xf32> to vector<8x128xf32>
    %28 = vector.extract_strided_slice %23 {offsets = [0, 512], sizes = [8, 128], strides = [1, 1]} : vector<8x640xf32> to vector<8x128xf32>
    %c0_13 = arith.constant 0 : index
    %c0_14 = arith.constant 0 : index
    %c0_15 = arith.constant 0 : index
    %29 = vector.load %arg3[%c0_13, %c0_14, %c0_15] : memref<2x8x128xf32, #tpu.memory_space<vmem>>, vector<1x8x128xf32>
    %30 = vector.shape_cast %29 : vector<1x8x128xf32> to vector<8x128xf32>
    %c1_16 = arith.constant 1 : index
    %c0_17 = arith.constant 0 : index
    %c0_18 = arith.constant 0 : index
    %31 = vector.load %arg3[%c1_16, %c0_17, %c0_18] : memref<2x8x128xf32, #tpu.memory_space<vmem>>, vector<1x8x128xf32>
    %32 = vector.shape_cast %31 : vector<1x8x128xf32> to vector<8x128xf32>
    %33 = arith.mulf %24, %30 : vector<8x128xf32>
    %34 = arith.mulf %25, %32 : vector<8x128xf32>
    %35 = arith.addf %33, %34 : vector<8x128xf32>
    %36 = arith.mulf %26, %30 : vector<8x128xf32>
    %37 = arith.mulf %27, %32 : vector<8x128xf32>
    %38 = arith.addf %36, %37 : vector<8x128xf32>
    %39 = vector.extract_strided_slice %35 {offsets = [0, 0], sizes = [8, 8], strides = [1, 1]} : vector<8x128xf32> to vector<8x8xf32>
    %40 = vector.extract_strided_slice %35 {offsets = [0, 8], sizes = [8, 8], strides = [1, 1]} : vector<8x128xf32> to vector<8x8xf32>
    %41 = vector.extract_strided_slice %35 {offsets = [0, 16], sizes = [8, 8], strides = [1, 1]} : vector<8x128xf32> to vector<8x8xf32>
    %42 = vector.extract_strided_slice %35 {offsets = [0, 24], sizes = [8, 8], strides = [1, 1]} : vector<8x128xf32> to vector<8x8xf32>
    %43 = tpu.concatenate %39, %40, %41, %42 in 0 : vector<8x8xf32>, vector<8x8xf32>, vector<8x8xf32>, vector<8x8xf32> -> vector<32x8xf32>
    %44 = vector.extract_strided_slice %38 {offsets = [0, 0], sizes = [8, 8], strides = [1, 1]} : vector<8x128xf32> to vector<8x8xf32>
    %45 = vector.extract_strided_slice %38 {offsets = [0, 8], sizes = [8, 8], strides = [1, 1]} : vector<8x128xf32> to vector<8x8xf32>
    %46 = vector.extract_strided_slice %38 {offsets = [0, 16], sizes = [8, 8], strides = [1, 1]} : vector<8x128xf32> to vector<8x8xf32>
    %47 = vector.extract_strided_slice %38 {offsets = [0, 24], sizes = [8, 8], strides = [1, 1]} : vector<8x128xf32> to vector<8x8xf32>
    %48 = tpu.concatenate %44, %45, %46, %47 in 0 : vector<8x8xf32>, vector<8x8xf32>, vector<8x8xf32>, vector<8x8xf32> -> vector<32x8xf32>
    %cst_19 = arith.constant dense<0.000000e+00> : vector<32x32xf32>
    %49 = tpu.matmul %43, %48, %cst_19 {dimension_numbers = #tpu.dot_dimension_numbers<[1], [1], [0], [0], [0, 0, 1, 0], [], []>} : vector<32x8xf32>, vector<32x8xf32>, vector<32x32xf32> -> vector<32x32xf32>
    %c0_20 = arith.constant 0 : index
    %c0_21 = arith.constant 0 : index
    %50 = vector.load %arg4[%c0_20, %c0_21] : memref<32x32xf32, #tpu.memory_space<vmem>>, vector<32x32xf32>
    %51 = arith.addf %49, %50 : vector<32x32xf32>
    %cst_22 = arith.constant dense<0xFF800000> : vector<32xf32>
    %52 = vector.multi_reduction <maximumf>, %51, %cst_22 [1] : vector<32x32xf32> to vector<32xf32>
    %53 = vector.shape_cast %52 : vector<32xf32> to vector<32x1xf32>
    %54 = vector.broadcast %53 : vector<32x1xf32> to vector<32x32xf32>
    %55 = arith.subf %51, %54 : vector<32x32xf32>
    %56 = math.exp %55 : vector<32x32xf32>
    %cst_23 = arith.constant dense<0.000000e+00> : vector<32xf32>
    %57 = vector.multi_reduction <add>, %56, %cst_23 [1] : vector<32x32xf32> to vector<32xf32>
    %58 = vector.shape_cast %57 : vector<32xf32> to vector<32x1xf32>
    %59 = tpu.reciprocal %58 {approx = true} : vector<32x1xf32> -> vector<32x1xf32>
    %60 = vector.broadcast %59 : vector<32x1xf32> to vector<32x32xf32>
    %61 = arith.mulf %56, %60 : vector<32x32xf32>
    %62 = tpu.concatenate %28, %28, %28, %28 in 0 : vector<8x128xf32>, vector<8x128xf32>, vector<8x128xf32>, vector<8x128xf32> -> vector<32x128xf32>
    %cst_24 = arith.constant dense<0.000000e+00> : vector<32x128xf32>
    %63 = tpu.matmul %61, %62, %cst_24 {dimension_numbers = #tpu.dot_dimension_numbers<[1], [0], [0], [1], [0, 0, 1, 1], [], []>} : vector<32x32xf32>, vector<32x128xf32>, vector<32x128xf32> -> vector<32x128xf32>
    %c0_25 = arith.constant 0 : index
    %c0_26 = arith.constant 0 : index
    %64 = vector.load %arg5[%c0_25, %c0_26] : memref<32x128xf32, #tpu.memory_space<vmem>>, vector<32x128xf32>
    %65 = arith.mulf %63, %64 : vector<32x128xf32>
    %66 = vector.extract_strided_slice %65 {offsets = [0, 0], sizes = [8, 128], strides = [1, 1]} : vector<32x128xf32> to vector<8x128xf32>
    %67 = vector.extract_strided_slice %65 {offsets = [8, 0], sizes = [8, 128], strides = [1, 1]} : vector<32x128xf32> to vector<8x128xf32>
    %68 = arith.addf %66, %67 : vector<8x128xf32>
    %69 = vector.extract_strided_slice %65 {offsets = [16, 0], sizes = [8, 128], strides = [1, 1]} : vector<32x128xf32> to vector<8x128xf32>
    %70 = arith.addf %68, %69 : vector<8x128xf32>
    %71 = vector.extract_strided_slice %65 {offsets = [24, 0], sizes = [8, 128], strides = [1, 1]} : vector<32x128xf32> to vector<8x128xf32>
    %72 = arith.addf %70, %71 : vector<8x128xf32>
    %73 = arith.truncf %72 : vector<8x128xf32> to vector<8x128xbf16>
    %c0_27 = arith.constant 0 : index
    %c0_28 = arith.constant 0 : index
    %c0_29 = arith.constant 0 : index
    %74 = vector.load %arg8[%c0_27, %c0_28, %c0_29] : memref<1x128x32xbf16, #tpu.memory_space<vmem>>, vector<1x128x32xbf16>
    %75 = vector.shape_cast %74 : vector<1x128x32xbf16> to vector<128x32xbf16>
    %cst_30 = arith.constant dense<0.000000e+00> : vector<8x32xf32>
    %76 = tpu.matmul %73, %75, %cst_30 {dimension_numbers = #tpu.dot_dimension_numbers<[1], [0], [0], [1], [0, 0, 1, 1], [], []>} : vector<8x128xbf16>, vector<128x32xbf16>, vector<8x32xf32> -> vector<8x32xf32>
    %77 = arith.addf %3, %76 : vector<8x32xf32>
    %78 = arith.mulf %77, %77 : vector<8x32xf32>
    %cst_31 = arith.constant dense<0.000000e+00> : vector<8xf32>
    %79 = vector.multi_reduction <add>, %78, %cst_31 [1] : vector<8x32xf32> to vector<8xf32>
    %80 = vector.shape_cast %79 : vector<8xf32> to vector<8x1xf32>
    %cst_32 = arith.constant 3.200000e+01 : f32
    %81 = vector.broadcast %cst_32 : f32 to vector<8x1xf32>
    %82 = arith.divf %80, %81 : vector<8x1xf32>
    %cst_33 = arith.constant 9.99999974E-6 : f32
    %83 = vector.broadcast %cst_33 : f32 to vector<8x1xf32>
    %84 = arith.addf %82, %83 : vector<8x1xf32>
    %85 = math.rsqrt %84 : vector<8x1xf32>
    %86 = vector.broadcast %85 : vector<8x1xf32> to vector<8x32xf32>
    %87 = arith.mulf %77, %86 : vector<8x32xf32>
    %88 = vector.broadcast %7 : vector<1x32xf32> to vector<8x32xf32>
    %89 = arith.mulf %87, %88 : vector<8x32xf32>
    %90 = arith.truncf %89 : vector<8x32xf32> to vector<8x32xbf16>
    %c0_34 = arith.constant 0 : index
    %c0_35 = arith.constant 0 : index
    %c0_36 = arith.constant 0 : index
    %91 = vector.load %arg9[%c0_34, %c0_35, %c0_36] : memref<1x32x256xbf16, #tpu.memory_space<vmem>>, vector<1x32x256xbf16>
    %92 = vector.shape_cast %91 : vector<1x32x256xbf16> to vector<32x256xbf16>
    %cst_37 = arith.constant dense<0.000000e+00> : vector<8x256xf32>
    %93 = tpu.matmul %90, %92, %cst_37 {dimension_numbers = #tpu.dot_dimension_numbers<[1], [0], [0], [1], [0, 0, 1, 1], [], []>} : vector<8x32xbf16>, vector<32x256xbf16>, vector<8x256xf32> -> vector<8x256xf32>
    %94 = vector.extract_strided_slice %93 {offsets = [0, 0], sizes = [8, 128], strides = [1, 1]} : vector<8x256xf32> to vector<8x128xf32>
    %95 = vector.extract_strided_slice %93 {offsets = [0, 128], sizes = [8, 128], strides = [1, 1]} : vector<8x256xf32> to vector<8x128xf32>
    %96 = arith.negf %94 : vector<8x128xf32>
    %97 = math.exp %96 : vector<8x128xf32>
    %cst_38 = arith.constant 1.000000e+00 : f32
    %98 = vector.broadcast %cst_38 : f32 to vector<8x128xf32>
    %99 = arith.addf %98, %97 : vector<8x128xf32>
    %100 = arith.divf %98, %99 : vector<8x128xf32>
    %101 = arith.mulf %94, %100 : vector<8x128xf32>
    %102 = arith.mulf %101, %95 : vector<8x128xf32>
    %103 = arith.truncf %102 : vector<8x128xf32> to vector<8x128xbf16>
    %c0_39 = arith.constant 0 : index
    %c0_40 = arith.constant 0 : index
    %c0_41 = arith.constant 0 : index
    %104 = vector.load %arg10[%c0_39, %c0_40, %c0_41] : memref<1x128x32xbf16, #tpu.memory_space<vmem>>, vector<1x128x32xbf16>
    %105 = vector.shape_cast %104 : vector<1x128x32xbf16> to vector<128x32xbf16>
    %cst_42 = arith.constant dense<0.000000e+00> : vector<8x32xf32>
    %106 = tpu.matmul %103, %105, %cst_42 {dimension_numbers = #tpu.dot_dimension_numbers<[1], [0], [0], [1], [0, 0, 1, 1], [], []>} : vector<8x128xbf16>, vector<128x32xbf16>, vector<8x32xf32> -> vector<8x32xf32>
    %107 = arith.addf %77, %106 : vector<8x32xf32>
    %c0_43 = arith.constant 0 : index
    %c0_44 = arith.constant 0 : index
    %108 = vector.load %arg11[%c0_43, %c0_44] : memref<8x32xf32, #tpu.memory_space<vmem>>, vector<8x32xf32>
    tpu.vector_store %arg11[%c0_43, %c0_44], %107 {strides = array<i32>} : memref<8x32xf32, #tpu.memory_space<vmem>>, vector<8x32xf32>,
    return
  }
  func.func @transform_0(%arg0: i32, %arg1: i32) -> (i32, i32) {
    %c0_i32 = arith.constant 0 : i32
    %c0_i32_0 = arith.constant 0 : i32
    return %arg0, %c0_i32 : i32, i32
  }
  func.func @transform_1(%arg0: i32, %arg1: i32) -> (i32, i32, i32) {
    %c0_i32 = arith.constant 0 : i32
    %c0_i32_0 = arith.constant 0 : i32
    %c0_i32_1 = arith.constant 0 : i32
    %c0_i32_2 = arith.constant 0 : i32
    return %c0_i32, %c0_i32_0, %c0_i32_1 : i32, i32, i32
  }
  func.func @transform_2(%arg0: i32, %arg1: i32) -> (i32, i32) {
    %c0_i32 = arith.constant 0 : i32
    %c0_i32_0 = arith.constant 0 : i32
    %c0_i32_1 = arith.constant 0 : i32
    return %c0_i32, %c0_i32_0 : i32, i32
  }
  func.func @transform_3(%arg0: i32, %arg1: i32) -> (i32, i32) {
    %c0_i32 = arith.constant 0 : i32
    %c0_i32_0 = arith.constant 0 : i32
    %c0_i32_1 = arith.constant 0 : i32
    return %c0_i32, %c0_i32_0 : i32, i32
  }
  func.func @transform_4(%arg0: i32, %arg1: i32) -> (i32, i32, i32) {
    %c0_i32 = arith.constant 0 : i32
    %c0_i32_0 = arith.constant 0 : i32
    %c0_i32_1 = arith.constant 0 : i32
    return %arg1, %c0_i32, %c0_i32_0 : i32, i32, i32
  }
  func.func @transform_5(%arg0: i32, %arg1: i32) -> (i32, i32, i32) {
    %c0_i32 = arith.constant 0 : i32
    %c0_i32_0 = arith.constant 0 : i32
    %c0_i32_1 = arith.constant 0 : i32
    return %arg1, %c0_i32, %c0_i32_0 : i32, i32, i32
  }
  func.func @transform_6(%arg0: i32, %arg1: i32) -> (i32, i32, i32) {
    %c0_i32 = arith.constant 0 : i32
    %c0_i32_0 = arith.constant 0 : i32
    %c0_i32_1 = arith.constant 0 : i32
    return %arg1, %c0_i32, %c0_i32_0 : i32, i32, i32
  }
  func.func @transform_7(%arg0: i32, %arg1: i32) -> (i32, i32, i32) {
    %c0_i32 = arith.constant 0 : i32
    %c0_i32_0 = arith.constant 0 : i32
    %c0_i32_1 = arith.constant 0 : i32
    return %arg1, %c0_i32, %c0_i32_0 : i32, i32, i32
  }
  func.func @transform_8(%arg0: i32, %arg1: i32) -> (i32, i32, i32) {
    %c0_i32 = arith.constant 0 : i32
    %c0_i32_0 = arith.constant 0 : i32
    %c0_i32_1 = arith.constant 0 : i32
    return %arg1, %c0_i32, %c0_i32_0 : i32, i32, i32
  }
  func.func @transform_9(%arg0: i32, %arg1: i32) -> (i32, i32) {
    %c0_i32 = arith.constant 0 : i32
    %c0_i32_0 = arith.constant 0 : i32
    return %arg0, %c0_i32 : i32, i32
  }
}

</mosaic_0001>

<bundles_post_ra>
// kernel: tpu_custom_call.1
= control target key start
LH: loop header
LB: loop body
LE: loop exit
PB: predicated region body
PF: predicated region fallthrough
CT: control target
= control target key end

     0   :  { %s1893_s0 = inlined_call_operand.vmem [shape: f32[16,32], index: 0, kind: input, shape index: {}]   ;;  %s1894_s1 = inlined_call_operand.vmem [shape: f32[2,8,128], index: 1, kind: input, shape index: {}]   ;;  %s1895_s2 = inlined_call_operand.vmem [shape: f32[32,32], index: 2, kind: input, shape index: {}]   ;;  %s1896_s3 = inlined_call_operand.vmem [shape: f32[32,128], index: 3, kind: input, shape index: {}]   ;;  %s1897_s4 = inlined_call_operand.vmem [shape: f32[4,2,32], index: 4, kind: input, shape index: {}]   ;;  %s1898_s5 = inlined_call_operand.vmem [shape: bf16[4,32,640], index: 5, kind: input, shape index: {}]   ;;  %s1899_s6 = inlined_call_operand.vmem [shape: bf16[4,128,32], index: 6, kind: input, shape index: {}]   ;;  %s1900_s7 = inlined_call_operand.vmem [shape: bf16[4,32,256], index: 7, kind: input, shape index: {}]   ;;  %s1901_s8 = inlined_call_operand.vmem [shape: bf16[4,128,32], index: 8, kind: input, shape index: {}]   ;;  %s1902_s9 = inlined_call_operand.hbm [shape: f32[16,32], index: 9, kind: output, shape index: {}]  }
   0x1   :  { %1915 = sst [smem:[#allocation15_spill]] %s1902_s9 }
   0x2   :  { %14 = vsyncpa [#allocation3], 0 }
   0x3   :  { %16 = vsyncpa [#allocation3 + $0x1], 0  ;;  %s1624_s30 = smov 0   ;;  %s1626_s10 = smov 0  }
   0x4   :  { %s1628_s11 = smov 0   ;;  %s1630_s12 = smov 0  }
   0x5   :  { %s1632_s13 = smov 0   ;;  %s1634_s14 = smov 0  }
   0x6   :  { %s1636_s15 = smov 0   ;;  %s1638_s16 = smov 0  }
   0x7 LB: > { %1916 = sst [smem:[#allocation5_spill]] %s1540_s30  ;;  %s1176_s17 = sadd.s32 4294967295, %s1568_s16   ;;  %s1568_s16 = sphi %s1638_s16, %s22_s16   ;;  %s1564_s15 = sphi %s1636_s15, %s1939_s15   ;;  %s1560_s14 = sphi %s1634_s14, %s1938_s14   ;;  %s1556_s13 = sphi %s1632_s13, %s1937_s13   ;;  %s1552_s12 = sphi %s1630_s12, %s1936_s12   ;;  %s1548_s11 = sphi %s1628_s11, %s1935_s11   ;;  %s1544_s10 = sphi %s1626_s10, %s1941_s10   ;;  %s1540_s30 = sphi %s1624_s30, %s1940_s30  }
   0x8   : > { %1917 = sst [smem:[#allocation6_spill]] %s1548_s11  ;;  %s1177_s18 = sadd.s32 4294967294, %s1568_s16  }
   0x9   : > { %1918 = sst [smem:[#allocation7_spill]] %s1560_s14  ;;  %s31_s19 = sadd.s32 1, %s1560_s14 }
   0xa   : > { %1919 = sst [smem:[#allocation8_spill]] %s1564_s15  ;;  %p32_p0 = scmp.ge.s32.totalorder %s31_s19, 4 }
   0xb   : > { %1920 = sst [smem:[#allocation9_spill]] %s1568_s16  ;;  %s34_s20 = sadd.s32 1, %s1564_s15 }
   0xc   : > { %p270_p1 = scmp.ne.s32.totalorder %s1548_s11, %s1544_s10  ;;  %p271_p2 = scmp.eq.s32.totalorder %s1176_s17, 7 }
   0xd   : > { %s1943_s19 = smov (%p32_p0, %s31_s19), 0  ;;  %s1945_s20 = smov (!%p32_p0, %s34_s20), %s1564_s15 }
   0xe   : > { %1921 = sst [smem:[#allocation10_spill]] %s1943_s19  ;;  %p1673_p3 = por %p271_p2, %p270_p1 }
   0xf   : > { %p276_p4 = scmp.ne.s32.totalorder %s1544_s10, %s1540_s30  ;;  %p36_p5 = scmp.ge.s32.totalorder %s1945_s20, 2 }
  0x10   : > { %s1922_s21 = scalar_select %p1673_p3, 1, 0 }
  0x11   : > { %p277_p6 = scmp.eq.s32.totalorder %s1177_s18, 7  ;;  %p1180_p7 = scmp.ge.s32.totalorder %s1568_s16, 1 }
  0x12   : > { %1923 = sst [smem:[#allocation11_spill]] %s1922_s21  ;;  %p350_p8 = scmp.lt.s32.totalorder %s1568_s16, 9 }
  0x13   : > { %s1947_s20 = smov (%p36_p5, %s1945_s20), 0  ;;  %p1683_p9 = por %p277_p6, %p276_p4 }
  0x14   : > { %1924 = sst [smem:[#allocation12_spill]] %s1947_s20  ;;  %p351_p10 = pnand %p1180_p7, %p350_p8 }
  0x15   : > { %s1925_s22 = scalar_select %p1683_p9, 1, 0 }
  0x16   : > { %s257_s23 = ssub.s32 %s1564_s15, %s1947_s20  ;;  %s260_s24 = sadd.s32 1, %s1548_s11 }
  0x17   : > { %1926 = sst [smem:[#allocation13_spill]] %s1925_s22  ;;  %p258_p11 = scmp.eq.s32.totalorder %s257_s23, 0 }
  0x18   : > { %354 = sbr.rel (%p351_p10) target bundleno = 1584 (0x630), region = 56  ;;  %s1911_s26 = sand.u32 (!%p351_p10), 1, %s1544_s10  }
  0x19   : > { %s1691_s25 = scalar_select %p258_p11, %s1548_s11, %s260_s24  }
  0x1a   : > { %p409_p12 = scmp.lt.s32.totalorder (!%p351_p10), %s1556_s13, 1  ;;  %s1181_s27 = sshll.u32 (!%p351_p10), %s1911_s26, 3 }
  0x1b   : > { %1927 = sst [smem:[#allocation14_spill]] %s1691_s25  ;;  %p413_p13 = scmp.lt.s32.totalorder (!%p351_p10), %s1552_s12, 3 }
  0x1c   : > { %p1191_p0 = scmp.ne.s32.totalorder (!%p351_p10), %s1552_s12, 0 }
  0x1d   : > { %s410_s28 = scalar_select %p409_p12, %s1556_s13, 1 }
  0x1e   : > { %s414_s29 = scalar_select %p413_p13, %s1552_s12, 3 }
  0x1f   : > { %s1182_s17 = sshll.u32 %s410_s28, 3 }
  0x20   : > { %s412_s23 = scalar_lea.vmem %s1893_s0, %s1182_s17  ;;  %s1183_s24 = sshll.u32 %s414_s29, 1 }
  0x21   : > { %s1706_s14 = scalar_lea.vmem %s1897_s4, %s1183_s24  ;;  %s1370_s25 = smul.u32 80, %s414_s29 }
  0x22   : > { %s1337_s11 = sshll.u32 %s414_s29, 6  ;;  %s1338_s22 = sshll.u32 %s414_s29, 5 }
  0x23   : > { %s1711_s26 = scalar_lea.vmem %s1898_s5, %s1370_s25  ;;  %s1716_s21 = scalar_lea.vmem %s1899_s6, %s1337_s11 }
  0x24   : > { %s1721_s18 = scalar_lea.vmem %s1900_s7, %s1338_s22  ;;  %s1726_s24 = scalar_lea.vmem %s1901_s8, %s1337_s11 }
  0x25   : > { %s1728_s29 = scalar_lea.vmem [#allocation2], %s1181_s27  ;;  %441 = sbr.rel (%p1191_p0) target bundleno = 44 (0x2c), region = 60 }
  0x2a   : > { %v442_v0 = vld [vmem:[%s412_s23] sm:$0xff]  ;;  %vm443_vm0 = vcmask 261120  }
  0x2b   : > { %444 = vst.msk [vmem:[%s1728_s29] sm:$0xff] %vm443_vm0, %v442_v0 }
  0x2c PF: > { %vm449_vm1 = vcmask 261120   ;;  %v1570_v4 = vmov 32.0   ;;  %v1214_v8 = vld [vmem:[%s1711_s26 + $0x28] sm:$0xf]  ;;  %v1347_v9 = vld [vmem:[%s1711_s26 + $0x38] sm:$0xf0] }
  0x2d   : > { %1448 = vrcp.f32 %v1570_v4  ;;  %v1345_v10 = vld [vmem:[%s1711_s26 + $0x2c] sm:$0xf]  ;;  %v1215_v11 = vor.u32 %v1347_v9, %v1214_v8  ;;  %v1216_v12 = vld [vmem:[%s1711_s26 + $0x3c] sm:$0xf0]  ;;  %v1222_v13 = vld [vmem:[%s1711_s26 + $0x30] sm:$0xf] }
  0x2e   : > { %v1348_v14 = vld [vmem:[%s1711_s26 + $0x40] sm:$0xf0]  ;;  %v1219_v15 = vor.u32 %v1345_v10, %v1216_v12  ;;  %v1346_v17 = vld [vmem:[%s1711_s26 + $0x34] sm:$0xf]  ;;  %v1224_v18 = vld [vmem:[%s1711_s26 + $0x44] sm:$0xf0] }
  0x2f   : > { %v1223_v16 = vor.u32 %v1348_v14, %v1222_v13  ;;  %549 = vmatpush.bf16.msra.mxu0 %v1215_v11  ;;  %v1227_v20 = vor.u32 %v1346_v17, %v1224_v18  ;;  %v1194_v21 = vld [vmem:[%s1711_s26] sm:$0xf]  ;;  %v1342_v22 = vld [vmem:[%s1711_s26 + $0x10] sm:$0xf0]  ;;  %v1340_v23 = vld [vmem:[%s1711_s26 + $0x4] sm:$0xf] }
  0x30   : > { %562 = vmatpush.bf16.msra.mxu1 %v1219_v15  ;;  %v1195_v24 = vor.u32 %v1342_v22, %v1194_v21  ;;  %v1196_v25 = vld [vmem:[%s1711_s26 + $0x14] sm:$0xf0]  ;;  %v1202_v26 = vld [vmem:[%s1711_s26 + $0x8] sm:$0xf]  ;;  %v1343_v27 = vld [vmem:[%s1711_s26 + $0x18] sm:$0xf0] }
  0x31   : > { %575 = vmatpush.bf16.msra.mxu2 %v1223_v16  ;;  %588 = vmatpush.bf16.msra.mxu3 %v1227_v20  ;;  %v1199_v28 = vor.u32 %v1340_v23, %v1196_v25  ;;  %v1203_v29 = vor.u32 %v1343_v27, %v1202_v26  ;;  %v1341_v30 = vld [vmem:[%s1711_s26 + $0xc] sm:$0xf]  ;;  %v1204_v31 = vld [vmem:[%s1711_s26 + $0x1c] sm:$0xf0]  ;;  %v1230_v35 = vld [vmem:[%s1711_s26 + $0x38] sm:$0xf] }
  0x32   : > { %v1733_v1 = vld [vmem:[%s1728_s29] sm:$0xff]  ;;  %v1207_v33 = vor.u32 %v1341_v30, %v1204_v31  ;;  %v1210_v37 = vld [vmem:[%s1711_s26 + $0x10] sm:$0xf]  ;;  %s1571_s16 = smov 120   ;;  %s1572_s22 = smov 112   ;;  %vm635_vm6 = vcmask 64512  }
  0x33   : > { %v448_v2 = vmul.f32 %v1733_v1, %v1733_v1  ;;  %v1449_v5 = vpop.eup %1448  ;;  %550 = vmatpush.bf16.msra.mxu0 %v1195_v24  ;;  %v1349_v36 = vld [vmem:[%s1711_s26 + $0x48] sm:$0xf0]  ;;  %v1344_v39 = vld [vmem:[%s1711_s26 + $0x20] sm:$0xf0]  ;;  %v1446_v50 = vld [vmem:[%s1706_s14] ss:$0 sm:$0xff] }
  0x34   : > { %v454_v6 = vmul.f32 32.0, %v1449_v5  ;;  %vm458_vm2 = vweird.f32 %v1449_v5  ;;  %563 = vmatpush.bf16.msra.mxu1 %v1199_v28  ;;  %v1231_v38 = vor.u32 %v1349_v36, %v1230_v35  ;;  %v1211_v42 = vor.u32 %v1344_v39, %v1210_v37  ;;  %v608_v55 = vld [vmem:[%s1894_s1] sm:$0xff]  ;;  %v1237_v56 = vld [vmem:[%s1894_s1 + $0x8] sm:$0xff]  ;;  %s1573_s25 = smov 104   ;;  %v633_v24 = vld [vmem:[%s1895_s2 + $0x10] sm:$0xff]  ;;  %s1929_s27 = sld [smem:[#allocation15_spill]] }
  0x35   : > { %v450_v3 = vsel %vm449_vm1, %v448_v2, 0.0  ;;  %576 = vmatpush.bf16.msra.mxu2 %v1203_v29  ;;  %589 = vmatpush.bf16.msra.mxu3 %v1207_v33  ;;  %v631_v16 = vld [vmem:[%s1895_s2] sm:$0xff]  ;;  %v632_v20 = vld [vmem:[%s1895_s2 + $0x8] sm:$0xff]  ;;  %v634_v28 = vld [vmem:[%s1895_s2 + $0x18] sm:$0xff]  ;;  %s1043_s28 = sshll.u32 %s1728_s29, 4  ;;  %s1930_s17 = sand.u32 1, %s1544_s10   ;;  %s1044_s28 = int_to_ptr.vmem [resolvable:$true] %s1043_s28 }
  0x36   : > { %451 = vadd.xlane.f32.xlu0 %v450_v3  ;;  %v455_v7 = vsub.f32 1.0, %v454_v6  ;;  %s1031_s15 = scalar_lea.sflag [#allocation3], %s1930_s17 }
  0x37   : > { %601 = vmatpush.bf16.msrb.mxu0 %v1231_v38 }
  0x38   : > { %v456_v19 = vmul.f32 %v1449_v5, %v455_v7 }
  0x3a   : > { %v457_v32 = vadd.f32 %v1449_v5, %v456_v19  ;;  %s1494_s11 = scalar_lea.hbm %s1929_s27, 16 }
  0x3b   : > { %602 = vmatpush.bf16.msrb.mxu0 %v1211_v42 }
  0x3c   : > { %v1754_v34 = vsel %vm458_vm2, %v1449_v5, %v457_v32 }
  0xa9   : > { %v452_v40 = vpop.xlane.xlu0 %451 }
  0xaa   : > { %v460_v41 = vmul.f32 %v1754_v34, %v452_v40 }
  0xac   : > { %v461_v43 = vadd.f32 1e-05, %v460_v41 }
  0xae   : > { %1450 = vrsqrt.f32 %v461_v43  ;;  %vm468_vm4 = vweird.f32 %v461_v43 }
  0xb4   : > { %v1451_v44 = vpop.eup %1450 }
  0xb5   : > { %v463_v45 = vmul.f32 %v1451_v44, %v461_v43  ;;  %vm469_vm3 = vweird.f32 %v1451_v44 }
  0xb6   : > { %vm470_vm5 = vmor %vm468_vm4, %vm469_vm3 }
  0xb7   : > { %v464_v46 = vmul.f32 %v1451_v44, %v463_v45 }
  0xb9   : > { %v465_v47 = vmul.f32 0.5, %v464_v46 }
  0xbb   : > { %v466_v48 = vsub.f32 1.5, %v465_v47 }
  0xbd   : > { %v467_v49 = vmul.f32 %v1451_v44, %v466_v48 }
  0xbf   : > { %v471_v51 = vsel %vm470_vm5, %v1451_v44, %v467_v49 }
  0xc0   : > { %v472_v52 = vmul.f32 %v471_v51, %v1733_v1 }
  0xc2   : > { %v474_v53 = vmul.f32 %v1446_v50, %v472_v52 }
  0xc4   : > { %v475_v54 = vpack.c.bf16 %v474_v53, %v474_v53 }
  0xc6   : > { %1232 = vmatmul.msk.bf16.vlgmr.msra.gmra.mxu0 %vm449_vm1, %v475_v54  ;;  %1233 = vmatmul.msk.bf16.vlgmr.msra.gmra.mxu1 %vm449_vm1, %v475_v54 }
  0xc7   : > { %1234 = vmatmul.msk.bf16.vlgmr.msra.gmra.mxu2 %vm449_vm1, %v475_v54  ;;  %1235 = vmatmul.msk.bf16.vlgmr.msra.gmra.mxu3 %vm449_vm1, %v475_v54 }
  0xd6   : > { %1236 = vmatmul.msk.bf16.vlgmr.msrb.gmra.mxu0 %vm449_vm1, %v475_v54 }
 0x143   : > { %v552_v57 = vpop.f32.mrf.mxu0  ;;  %v565_v58 = vpop.f32.mrf.mxu1 }
 0x144   : > { %v611_v59 = vmul.f32 %v608_v55, %v552_v57  ;;  %v612_v60 = vmul.f32 %v1237_v56, %v565_v58 }
 0x146   : > { %v613_v61 = vadd.f32 %v612_v60, %v611_v59 }
 0x148   : > { %618 = vrot.lane.b32.xlu2 %v613_v61, %s1571_s16 }
 0x14a   : > { %v578_v62 = vpop.f32.mrf.mxu2  ;;  %v591_v63 = vpop.f32.mrf.mxu3 }
 0x14b   : > { %v614_v0 = vmul.f32 %v608_v55, %v578_v62  ;;  %v615_v2 = vmul.f32 %v1237_v56, %v591_v63  ;;  %v554_v3 = vpop.f32.mrf.mxu0  ;;  %v567_v4 = vpop.f32.mrf.mxu1 }
 0x14c   : > { %v1356_v3 = vld [vmem:[%s1716_s21 + $0x30] sm:$0xff]  ;;  %v1355_v4 = vld [vmem:[%s1716_s21 + $0x28] sm:$0xff] }
 0x14d   : > { %v616_v5 = vadd.f32 %v615_v2, %v614_v0  ;;  %v1357_v2 = vld [vmem:[%s1716_s21 + $0x38] sm:$0xff] }
 0x14e   : > { %842 = vmatpush.bf16.msrb.mxu3 %v1357_v2 }
 0x14f   : > { %627 = vrot.lane.b32.xlu1 %v616_v5, %s1572_s22  ;;  %629 = vrot.lane.b32.xlu0 %v616_v5, %s1573_s25 }
 0x150   : > { %620 = vrot.lane.b32.xlu2 %v613_v61, %s1572_s22 }
 0x152   : > { %v580_v6 = vpop.f32.mrf.mxu2  ;;  %v593_v7 = vpop.f32.mrf.mxu3  ;;  %843 = vmatpush.bf16.msrb.mxu3 %v1356_v3 }
 0x153   : > { %v604_v8 = vpop.f32.mrf.mxu0  ;;  %v1353_v6 = vld [vmem:[%s1716_s21 + $0x18] sm:$0xff]  ;;  %v1352_v7 = vld [vmem:[%s1716_s21 + $0x10] sm:$0xff] }
 0x154   : > { %749 = vmatpush.msrb.mxu2 %v604_v8 }
 0x156   : > { %750 = vmatpush.msrb.mxu2 %v604_v8  ;;  %844 = vmatpush.bf16.msrb.mxu3 %v1355_v4 }
 0x157   : > { %625 = vrot.lane.b32.xlu1 %v616_v5, %s1571_s16 }
 0x158   : > { %751 = vmatpush.msrb.mxu2 %v604_v8 }
 0x15a   : > { %752 = vmatpush.msrb.mxu2 %v604_v8  ;;  %v1351_v8 = vld [vmem:[%s1716_s21 + $0x8] sm:$0xff] }
 0x15b   : > { %v606_v9 = vpop.f32.mrf.mxu0 }
 0x15c   : > { %v1350_v9 = vld [vmem:[%s1716_s21] sm:$0xff] }
 0x15f   : > { %622 = vrot.lane.b32.xlu1 %v613_v61, %s1573_s25 }
 0x1a2   : > { %v619_v13 = vpop.permute.xlu2 %618 }
 0x1aa   : > { %v621_v14 = vpop.permute.xlu2 %620 }
 0x1c1   : > { %v628_v10 = vpop.permute.xlu1 %627  ;;  %v630_v11 = vpop.permute.xlu0 %629 }
 0x1c2   : > { %1238 = vmatpush.xpose.msk.msrb.mxu1 %vm635_vm6, %v630_v11 }
 0x1c6   : > { %1239 = vmatpush.xpose.msk.msrb.mxu1 %vm635_vm6, %v628_v10 }
 0x1c9   : > { %v626_v12 = vpop.permute.xlu1 %625 }
 0x1ca   : > { %1240 = vmatpush.xpose.msk.msrb.mxu1 %vm635_vm6, %v626_v12  ;;  %v767_v12 = vld [vmem:[%s1896_s3 + $0x8] sm:$0xff] }
 0x1ce   : > { %1241 = vmatpush.xpose.msk.msrb.mxu1 %vm635_vm6, %v616_v5  ;;  %v1354_v5 = vld [vmem:[%s1716_s21 + $0x20] sm:$0xff] }
 0x1cf   : > { %845 = vmatpush.bf16.msrb.mxu3 %v1354_v5 }
 0x1d1   : > { %1242 = vmatmul.msk.f32.vlgmr.msrb.gmra.mxu1 %vm635_vm6, %v613_v61  ;;  %v623_v15 = vpop.permute.xlu1 %622 }
 0x1d3   : > { %846 = vmatpush.bf16.msrb.mxu3 %v1353_v6 }
 0x1d7   : > { %847 = vmatpush.bf16.msrb.mxu3 %v1352_v7 }
 0x1d9   : > { %1243 = vmatmul.msk.f32.gmra.mxu1 %vm635_vm6, %v619_v13 }
 0x1db   : > { %848 = vmatpush.bf16.msrb.mxu3 %v1351_v8 }
 0x1df   : > { %849 = vmatpush.bf16.msrb.mxu3 %v1350_v9 }
 0x1e1   : > { %1244 = vmatmul.msk.f32.gmra.mxu1 %vm635_vm6, %v621_v14  ;;  %v766_v14 = vld [vmem:[%s1896_s3] sm:$0xff] }
 0x1e9   : > { %1245 = vmatmul.msk.f32.gmra.mxu1 %vm635_vm6, %v623_v15  ;;  %v768_v15 = vld [vmem:[%s1896_s3 + $0x10] sm:$0xff] }
 0x24e   : > { %v669_v17 = vpop.f32.mrf.mxu1 }
 0x24f   : > { %v670_v18 = vadd.f32 %v669_v17, %v631_v16 }
 0x251   : > { %v681_v19 = vsel %vm449_vm1, %v670_v18, -inf }
 0x252   : > { %682 = vmax.xlane.f32.xlu2 %v681_v19  ;;  %v769_v19 = vld [vmem:[%s1896_s3 + $0x18] sm:$0xff] }
 0x256   : > { %v672_v21 = vpop.f32.mrf.mxu1 }
 0x257   : > { %v673_v22 = vadd.f32 %v672_v21, %v632_v20 }
 0x259   : > { %v684_v23 = vsel %vm449_vm1, %v673_v22, -inf }
 0x25a   : > { %685 = vmax.xlane.f32.xlu1 %v684_v23 }
 0x25e   : > { %v675_v25 = vpop.f32.mrf.mxu1 }
 0x25f   : > { %v676_v26 = vadd.f32 %v675_v25, %v633_v24 }
 0x261   : > { %v687_v27 = vsel %vm449_vm1, %v676_v26, -inf }
 0x262   : > { %688 = vmax.xlane.f32.xlu0 %v687_v27 }
 0x266   : > { %v678_v29 = vpop.f32.mrf.mxu1 }
 0x267   : > { %v679_v30 = vadd.f32 %v678_v29, %v634_v28 }
 0x269   : > { %v690_v31 = vsel %vm449_vm1, %v679_v30, -inf }
 0x26a   : > { %691 = vmax.xlane.f32.xlu2 %v690_v31  ;;  %v1292_v31 = vld [vmem:[%s1721_s18 + $0x10] sm:$0xf] }
 0x2c5   : > { %v683_v32 = vpop.xlane.xlu2 %682 }
 0x2c6   : > { %v693_v33 = vsub.f32 %v670_v18, %v683_v32  ;;  %v1361_v32 = vld [vmem:[%s1721_s18 + $0x14] sm:$0xf0] }
 0x2c8   : > { %v697_v35 = vmul.f32 1.442695, %v693_v33  ;;  %v1293_v33 = vor.u32 %v1361_v32, %v1292_v31 }
 0x2ca   : > { %1452 = vpow2.f32 %v697_v35  ;;  %909 = vmatpush.bf16.msra.mxu0 %v1293_v33  ;;  %v1284_v35 = vld [vmem:[%s1721_s18] sm:$0xf] }
 0x2cd   : > { %v686_v36 = vpop.xlane.xlu1 %685 }
 0x2ce   : > { %v694_v37 = vsub.f32 %v673_v22, %v686_v36  ;;  %v1359_v36 = vld [vmem:[%s1721_s18 + $0x4] sm:$0xf0] }
 0x2d0   : > { %v1453_v38 = vpop.eup %1452  ;;  %v699_v39 = vmul.f32 1.442695, %v694_v37  ;;  %v1285_v37 = vor.u32 %v1359_v36, %v1284_v35 }
 0x2d1   : > { %v705_v40 = vsel %vm449_vm1, %v1453_v38, 0.0 }
 0x2d2   : > { %1454 = vpow2.f32 %v699_v39  ;;  %706 = vadd.xlane.f32.xlu2 %v705_v40  ;;  %910 = vmatpush.bf16.msra.mxu0 %v1285_v37  ;;  %v1294_v39 = vld [vmem:[%s1721_s18 + $0x18] sm:$0xf0] }
 0x2d5   : > { %v689_v41 = vpop.xlane.xlu0 %688 }
 0x2d6   : > { %v695_v42 = vsub.f32 %v676_v26, %v689_v41  ;;  %v1286_v41 = vld [vmem:[%s1721_s18 + $0x8] sm:$0xf0] }
 0x2d8   : > { %v1455_v43 = vpop.eup %1454  ;;  %v701_v44 = vmul.f32 1.442695, %v695_v42 }
 0x2d9   : > { %v708_v45 = vsel %vm449_vm1, %v1455_v43, 0.0 }
 0x2da   : > { %1456 = vpow2.f32 %v701_v44  ;;  %709 = vadd.xlane.f32.xlu1 %v708_v45 }
 0x2dd   : > { %v692_v46 = vpop.xlane.xlu2 %691 }
 0x2de   : > { %v696_v47 = vsub.f32 %v679_v30, %v692_v46 }
 0x2e0   : > { %v1457_v48 = vpop.eup %1456  ;;  %v703_v49 = vmul.f32 1.442695, %v696_v47 }
 0x2e1   : > { %v711_v50 = vsel %vm449_vm1, %v1457_v48, 0.0 }
 0x2e2   : > { %1458 = vpow2.f32 %v703_v49  ;;  %712 = vadd.xlane.f32.xlu0 %v711_v50 }
 0x2e8   : > { %v1459_v51 = vpop.eup %1458 }
 0x2e9   : > { %v714_v52 = vsel %vm449_vm1, %v1459_v51, 0.0 }
 0x2ea   : > { %715 = vadd.xlane.f32.xlu2 %v714_v52  ;;  %v1447_v52 = vld [vmem:[%s1706_s14 + $0x1] ss:$0 sm:$0xff] }
 0x345   : > { %v707_v53 = vpop.xlane.xlu2 %706 }
 0x346   : > { %1460 = vrcp.f32 %v707_v53 }
 0x34c   : > { %v1461_v54 = vpop.eup %1460 }
 0x34d   : > { %v710_v55 = vpop.xlane.xlu1 %709  ;;  %v721_v56 = vmul.f32 %v1461_v54, %v1453_v38  ;;  %v1360_v38 = vld [vmem:[%s1721_s18 + $0x14] sm:$0xf] }
 0x34e   : > { %1462 = vrcp.f32 %v710_v55  ;;  %v1297_v40 = vor.u32 %v1360_v38, %v1294_v39 }
 0x34f   : > { %1246 = vmatmul.msk.f32.vlgmr.msrb.gmra.mxu2 %vm449_vm1, %v721_v56  ;;  %v1369_v56 = vld [vmem:[%s1726_s24 + $0x38] sm:$0xff] }
 0x350   : > { %922 = vmatpush.bf16.msrb.mxu0 %v1297_v40  ;;  %1015 = vmatpush.bf16.msra.mxu1 %v1369_v56 }
 0x354   : > { %v1463_v57 = vpop.eup %1462 }
 0x355   : > { %v713_v58 = vpop.xlane.xlu0 %712  ;;  %v722_v59 = vmul.f32 %v1463_v57, %v1455_v43  ;;  %v1368_v57 = vld [vmem:[%s1726_s24 + $0x30] sm:$0xff] }
 0x356   : > { %1464 = vrcp.f32 %v713_v58  ;;  %1016 = vmatpush.bf16.msra.mxu1 %v1368_v57  ;;  %v1367_v58 = vld [vmem:[%s1726_s24 + $0x28] sm:$0xff] }
 0x357   : > { %1247 = vmatmul.msk.f32.gmra.mxu2 %vm449_vm1, %v722_v59  ;;  %v1366_v59 = vld [vmem:[%s1726_s24 + $0x20] sm:$0xff] }
 0x35a   : > { %1017 = vmatpush.bf16.msra.mxu1 %v1367_v58 }
 0x35c   : > { %v1465_v60 = vpop.eup %1464 }
 0x35d   : > { %v716_v61 = vpop.xlane.xlu2 %715  ;;  %v723_v62 = vmul.f32 %v1465_v60, %v1457_v48  ;;  %v1365_v60 = vld [vmem:[%s1726_s24 + $0x18] sm:$0xff] }
 0x35e   : > { %1466 = vrcp.f32 %v716_v61  ;;  %1018 = vmatpush.bf16.msra.mxu1 %v1366_v59  ;;  %v1364_v61 = vld [vmem:[%s1726_s24 + $0x10] sm:$0xff] }
 0x35f   : > { %1248 = vmatmul.msk.f32.gmra.mxu2 %vm449_vm1, %v723_v62  ;;  %v1363_v62 = vld [vmem:[%s1726_s24 + $0x8] sm:$0xff] }
 0x362   : > { %1019 = vmatpush.bf16.msra.mxu1 %v1365_v60 }
 0x364   : > { %v1467_v63 = vpop.eup %1466 }
 0x365   : > { %v724_v0 = vmul.f32 %v1467_v63, %v1459_v51  ;;  %v1362_v63 = vld [vmem:[%s1726_s24] sm:$0xff] }
 0x366   : > { %1020 = vmatpush.bf16.msra.mxu1 %v1364_v61 }
 0x367   : > { %1249 = vmatmul.msk.f32.gmra.mxu2 %vm449_vm1, %v724_v0 }
 0x36a   : > { %1021 = vmatpush.bf16.msra.mxu1 %v1363_v62 }
 0x36e   : > { %1022 = vmatpush.bf16.msra.mxu1 %v1362_v63 }
 0x3d2   : > { %v754_v10 = vpop.f32.mrf.mxu2 }
 0x3d3   : > { %v770_v17 = vmul.f32 %v766_v14, %v754_v10 }
 0x3da   : > { %v757_v11 = vpop.f32.mrf.mxu2 }
 0x3db   : > { %v771_v16 = vmul.f32 %v767_v12, %v757_v11 }
 0x3dd   : > { %v774_v20 = vadd.f32 %v771_v16, %v770_v17 }
 0x3e2   : > { %v760_v13 = vpop.f32.mrf.mxu2 }
 0x3e3   : > { %v772_v18 = vmul.f32 %v768_v15, %v760_v13 }
 0x3e5   : > { %v775_v22 = vadd.f32 %v774_v20, %v772_v18 }
 0x3ea   : > { %v763_v21 = vpop.f32.mrf.mxu2 }
 0x3eb   : > { %v773_v23 = vmul.f32 %v769_v19, %v763_v21 }
 0x3ed   : > { %v776_v24 = vadd.f32 %v775_v22, %v773_v23 }
 0x3ef   : > { %v777_v25 = vpack.c.bf16 %v776_v24, %v776_v24 }
 0x3f1   : > { %850 = vmatmul.bf16.vlgmr.msrb.gmra.mxu3 %v777_v25 }
 0x474   : > { %v851_v26 = vpop.f32.mrf.mxu3 }
 0x475   : > { %v1819_v27 = vadd.f32 %v851_v26, %v1733_v1  ;;  %v1358_v1 = vld [vmem:[%s1721_s18 + $0x4] sm:$0xf]  ;;  %s1334_s18 = sshll.u32 %s1556_s13, 3 }
 0x476   : > { %v1289_v43 = vor.u32 %v1358_v1, %v1286_v41  ;;  %s1041_s23 = scalar_lea.hbm %s1929_s27, %s1334_s18 }
 0x477   : > { %v856_v28 = vmul.f32 %v1819_v27, %v1819_v27  ;;  %s1045_s20 = sshll.u32 %s1041_s23, 4  ;;  %s1046_s20 = int_to_ptr.hbm [resolvable:$true] %s1045_s20 }
 0x478   : > { %923 = vmatpush.bf16.msrb.mxu0 %v1289_v43  ;;  %s1488_s19 = sshra.s32 %s1046_s20, 4  ;;  %s1489_s19 = int_to_ptr.hbm [resolvable:$true] %s1488_s19 }
 0x479   : > { %v857_v29 = vsel %vm449_vm1, %v856_v28, 0.0  ;;  %s1490_s9 = scalar_lea.hbm %s1489_s19, 8  ;;  %p1495_p5 = scmp.lt.s32.totalorder %s1489_s19, %s1929_s27 }
 0x47a   : > { %858 = vadd.xlane.f32.xlu1 %v857_v29  ;;  %p1491_p1 = scmp.ne.s32.totalorder %s1489_s19, %s1490_s9  ;;  %p1496_p6 = scmp.lt.s32.totalorder %s1494_s11, %s1490_s9 }
 0x47c   : > { %v853_v30 = vpop.f32.mrf.mxu3  ;;  %p1492_p2 = pnand %p1491_p1, %p1673_p3  ;;  %p1497_p7 = por %p1496_p6, %p1495_p5 }
 0x47e   : > { %p1493_p4 = pneg %p1492_p2 }
 0x480   : > { %p1498_p8 = pnand %p1497_p7, %p1493_p4 }
 0x4ed   : > { %v859_v42 = vpop.xlane.xlu1 %858 }
 0x4ee   : > { %v860_v44 = vmul.f32 %v859_v42, %v1754_v34 }
 0x4f0   : > { %v861_v45 = vadd.f32 1e-05, %v860_v44 }
 0x4f2   : > { %1468 = vrsqrt.f32 %v861_v45  ;;  %vm868_vm8 = vweird.f32 %v861_v45 }
 0x4f8   : > { %v1469_v46 = vpop.eup %1468 }
 0x4f9   : > { %v863_v47 = vmul.f32 %v1469_v46, %v861_v45  ;;  %vm869_vm7 = vweird.f32 %v1469_v46 }
 0x4fa   : > { %vm870_vm9 = vmor %vm868_vm8, %vm869_vm7 }
 0x4fb   : > { %v864_v48 = vmul.f32 %v1469_v46, %v863_v47 }
 0x4fd   : > { %v865_v49 = vmul.f32 0.5, %v864_v48 }
 0x4ff   : > { %v866_v50 = vsub.f32 1.5, %v865_v49 }
 0x501   : > { %v867_v51 = vmul.f32 %v1469_v46, %v866_v50 }
 0x503   : > { %v871_v53 = vsel %vm870_vm9, %v1469_v46, %v867_v51 }
 0x504   : > { %v872_v34 = vmul.f32 %v871_v53, %v1819_v27 }
 0x506   : > { %v874_v54 = vmul.f32 %v1447_v52, %v872_v34 }
 0x508   : > { %v875_v55 = vpack.c.bf16 %v874_v54, %v874_v54 }
 0x50a   : > { %1298 = vmatmul.msk.bf16.vlgmr.msra.gmra.mxu0 %vm449_vm1, %v875_v55 }
 0x51a   : > { %1299 = vmatmul.msk.bf16.vlgmr.msrb.gmra.mxu0 %vm449_vm1, %v875_v55 }
 0x587   : > { %v912_v0 = vpop.f32.mrf.mxu0 }
 0x588   : > { %v1300_v2 = vmul.f32 -1.442695, %v912_v0 }
 0x58a   : > { %1470 = vpow2.f32 %v1300_v2 }
 0x58f   : > { %v914_v3 = vpop.f32.mrf.mxu0 }
 0x590   : > { %v1471_v4 = vpop.eup %1470 }
 0x591   : > { %v932_v5 = vadd.f32 1.0, %v1471_v4 }
 0x593   : > { %1472 = vrcp.f32 %v932_v5  ;;  %v944_v10 = vand.u32 2147483648, %v932_v5  ;;  %v942_v12 = vand.u32 2147483647, %v932_v5  ;;  %vm938_vm11 = vweird.f32 %v932_v5 }
 0x595   : > { %v945_v15 = vor.u32 1.1754944e-38, %v944_v10  ;;  %vm943_vm13 = vcmp.eq.f32.partialorder %v942_v12, 8.507059e+37 }
 0x597   : > { %v925_v6 = vpop.f32.mrf.mxu0 }
 0x599   : > { %v1473_v7 = vpop.eup %1472 }
 0x59a   : > { %v934_v8 = vmul.f32 %v1473_v7, %v932_v5  ;;  %vm939_vm10 = vweird.f32 %v1473_v7 }
 0x59b   : > { %vm940_vm12 = vmor %vm938_vm11, %vm939_vm10 }
 0x59c   : > { %v935_v9 = vsub.f32 1.0, %v934_v8 }
 0x59e   : > { %v936_v11 = vmul.f32 %v1473_v7, %v935_v9 }
 0x59f   : > { %v927_v13 = vpop.f32.mrf.mxu0 }
 0x5a0   : > { %v937_v14 = vadd.f32 %v1473_v7, %v936_v11 }
 0x5a2   : > { %v941_v16 = vsel %vm940_vm12, %v1473_v7, %v937_v14 }
 0x5a3   : > { %v946_v17 = vsel %vm943_vm13, %v945_v15, %v941_v16 }
 0x5a4   : > { %v948_v18 = vmul.f32 %v946_v17, %v912_v0 }
 0x5a6   : > { %v949_v19 = vmul.f32 %v948_v18, %v925_v6 }
 0x5a8   : > { %v950_v20 = vpack.c.bf16 %v949_v19, %v949_v19 }
 0x5aa   : > { %1023 = vmatmul.bf16.vlgmr.msra.gmra.mxu1 %v950_v20 }
 0x627   : > { %v1024_v21 = vpop.f32.mrf.mxu1 }
 0x628   : > { %v1028_v22 = vadd.f32 %v1024_v21, %v1819_v27 }
 0x62a   : > { %1029 = vst.msk [vmem:[%s1728_s29] sm:$0xff] %vm449_vm1, %v1028_v22 }
 0x62b   : > { %1501 = shalt.err (!%p1498_p8)
}
 0x62c   : > { %1371 = dma.vmem_to_hbm [thread:$0]  (%p1673_p3), %s1044_s28, 128, %s1046_s20, %s1031_s15  }
 0x62f   : > { %v1026_v23 = vpop.f32.mrf.mxu1 }
 0x630 PF: > { %s1931_s29 = sld [smem:[#allocation9_spill]] }
 0x631   : > { %s1932_s22 = sld [smem:[#allocation5_spill]] }
 0x636   : > { %p1377_p10 = scmp.ge.s32.totalorder %s1931_s29, 2 }
 0x637   : > { %s1057_s25 = sand.u32 1, %s1932_s22  }
 0x638   : > { %p1374_p11 = pnand %p1377_p10, %p1683_p9  ;;  %s1058_s18 = scalar_lea.sflag [#allocation3], %s1057_s25 }
 0x63a   : > { %p1375_p12 = pneg %p1374_p11 }
 0x63c   : > { %1535 = dma.done.wait (%p1375_p12), %s1058_s18, 128  }
 0x63d   : > { %1537 = vsyncadd (%p1375_p12), %s1058_s18, 4294967168  ;;  %s22_s16 = sadd.s32 1, %s1931_s29   ;;  %s1934_s24 = sld [smem:[#allocation6_spill]] }
 0x63e   : > { %p19_p13 = scmp.ge.s32.totalorder %s22_s16, 10   ;;  %s1935_s11 = sld [smem:[#allocation14_spill]] }
 0x63f   : > { %s1936_s12 = sld [smem:[#allocation7_spill]]  ;;  %s1940_s30 = smov %s1544_s10 }
 0x640   : > { %s1937_s13 = sld [smem:[#allocation8_spill]]  ;;  %21 = sbr.rel (!%p19_p13) target bundleno = 7 (0x7), region = 111 }
 0x641   : > { %s1938_s14 = sld [smem:[#allocation10_spill]] }
 0x642   : > { %s1939_s15 = sld [smem:[#allocation12_spill]] }
 0x643   : > { %s1941_s10 = smov %s1934_s24 }
 0x645   :  { %1064 = vsyncpa [#allocation3], 1 }
 0x646   :  { %1066 = vsyncpa [#allocation3 + $0x1], 1 }

</bundles_post_ra>
